<compile_context>
chip_gen: v6e
topology: v6e:2x2x1
jax: 0.10.0
libtpu: 0.0.40
codegen_flags: <defaults>
</compile_context>

<pallas_src>
import jax
import jax.numpy as jnp
from jax.experimental import pallas as pl
from jax.experimental.pallas import tpu as pltpu


def make_fused_kernel(repeat, kernel_size, pad, seg_len, n_chan, out_chan):
    """Build the fused all-blocks kernel (all sizes static)."""
    K = kernel_size

    def kernel(x_ref, chan_ref, pw_ref, skip_ref):
        x = x_ref[...].astype(jnp.float32)                       # [N, L], L = batch_tile*T
        N, L = x.shape

        # 'same'-padding edge masks, hoisted once for all blocks / all taps.
        t = jax.lax.broadcasted_iota(jnp.int32, (N, L), 1) % seg_len
        edge_mask = {}
        for k in range(K):
            off = k - pad
            if off != 0:
                edge_mask[off] = (t + off >= 0) & (t + off < seg_len)

        skip_acc = jnp.zeros((out_chan, L), jnp.float32)

        for r in range(repeat):                                  # static unroll over blocks
            cp = chan_ref[r].astype(jnp.float32)                 # [N, K+3]
            if r == 0:
                y = x                                            # first block: no ReLU/BN
            else:
                # PyTorch order: bn(relu(x)), BN folded into per-channel scale/shift.
                y = jnp.maximum(x, 0.0) * cp[:, K + 1:K + 2] + cp[:, K + 2:K + 3]

            # Depthwise conv along time: lane roll + mask, per tap.
            acc = cp[:, K:K + 1] + jnp.zeros_like(y)             # bias broadcast [N, L]
            for k in range(K):
                off = k - pad
                wk = cp[:, k:k + 1]                              # [N, 1]
                if off == 0:
                    acc = acc + y * wk
                else:
                    shifted = pltpu.roll(y, shift=(-off) % L, axis=1)
                    acc = acc + jnp.where(edge_mask[off], shifted * wk, 0.0)

            # 1x1 sconv over the whole batch in a single MXU matmul; accumulate skip.
            pp = pw_ref[r].astype(jnp.float32)                   # [C, N+1]
            skip_acc = skip_acc + (
                jnp.dot(pp[:, :n_chan], acc, preferred_element_type=jnp.float32)
                + pp[:, n_chan:n_chan + 1])

            x = acc if r == 0 else acc + x                       # residual (not on block 0)

        skip_ref[...] = skip_acc.astype(skip_ref.dtype)

    return kernel


def video_sequential_1d(x, chan, pw, *, kernel_size, batch_per_tile=None):
    """skip_con=True path of VideoSequential1D: returns the summed skip connection.

    x: [B, N, T], chan: [R, N, K+3], pw: [R, C, N+1]  ->  [B, C, T]
    """
    # TODO(synk): skip_con=False path (bconv + plain residual chain) not implemented here.
    B, N, T = x.shape
    R, C, _ = pw.shape
    pad = (kernel_size - 1) // 2
    if batch_per_tile is None:
        batch_per_tile = B            # one wide tile; use B//2 on v7x for 2-TC sharding
    assert B % batch_per_tile == 0
    L = B * T
    Lt = batch_per_tile * T

    # Lane-dense layout: batch folded into the time/lane axis -> [N, B*T].
    xl = jnp.transpose(x, (1, 0, 2)).reshape(N, L)

    kern = make_fused_kernel(R, kernel_size, pad, T, N, C)
    skip = pl.pallas_call(
        kern,
        out_shape=jax.ShapeDtypeStruct((C, L), jnp.float32),
        grid=(B // batch_per_tile,),
        in_specs=[
            pl.BlockSpec((N, Lt), lambda i: (0, i)),                     # activation slab
            pl.BlockSpec((R, N, kernel_size + 3), lambda i: (0, 0, 0)),  # packed per-chan params
            pl.BlockSpec((R, C, N + 1), lambda i: (0, 0, 0)),            # packed 1x1 params
        ],
        out_specs=pl.BlockSpec((C, Lt), lambda i: (0, i)),
        compiler_params=pltpu.CompilerParams(dimension_semantics=("parallel",)),
    )(xl, chan, pw)

    return skip.reshape(C, B, T).transpose(1, 0, 2)


# ------------------------- deterministic parameter init -------------------------

def init_params(key, in_channels, out_channels, kernel_size, repeat):
    """Per-block dicts (used by the pure-JAX reference)."""
    params = []
    eps = 1e-5
    for i in range(repeat):
        cin = out_channels if i else in_channels
        key, *ks = jax.random.split(key, 9)
        p = dict(
            dw=0.2 * jax.random.normal(ks[0], (cin, kernel_size), jnp.float32),
            db=0.1 * jax.random.normal(ks[1], (cin,), jnp.float32),
            sw=0.2 * jax.random.normal(ks[2], (out_channels, cin), jnp.float32),
            sb=0.1 * jax.random.normal(ks[3], (out_channels,), jnp.float32),
        )
        if i > 0:
            gamma = 1.0 + 0.1 * jax.random.normal(ks[4], (cin,), jnp.float32)
            beta = 0.1 * jax.random.normal(ks[5], (cin,), jnp.float32)
            rmean = 0.1 * jax.random.normal(ks[6], (cin,), jnp.float32)
            rvar = jnp.abs(1.0 + 0.1 * jax.random.normal(ks[7], (cin,), jnp.float32))
            scale = gamma / jnp.sqrt(rvar + eps)      # fold BN (eval) into scale/shift
            shift = beta - rmean * scale
        else:
            scale = jnp.ones((cin,), jnp.float32)     # unused in first block
            shift = jnp.zeros((cin,), jnp.float32)
        p["scale"], p["shift"] = scale, shift
        params.append(p)
    return params


def pack_params(params, kernel_size):
    """Stack per-block params: chan [R, N, K+3] = dw|db|scale|shift, pw [R, C, N+1] = sw|sb.

    Requires in_channels == out_channels so all blocks share the same shapes.
    """
    chan = jnp.stack([
        jnp.concatenate([p["dw"], p["db"][:, None], p["scale"][:, None],
                         p["shift"][:, None]], axis=1)
        for p in params])
    pw = jnp.stack([
        jnp.concatenate([p["sw"], p["sb"][:, None]], axis=1)
        for p in params])
    return chan, pw


# ------------------------------ pure-JAX reference ------------------------------

def _ref_block(x, p, first_block, pad):
    if first_block:
        y = x
    else:
        y = jnp.maximum(x, 0.0)
        y = y * p["scale"][None, :, None] + p["shift"][None, :, None]
    B, N, T = y.shape
    K = p["dw"].shape[1]
    ypad = jnp.pad(y, ((0, 0), (0, 0), (pad, pad)))
    conv = sum(p["dw"][None, :, k:k + 1] * ypad[:, :, k:k + T] for k in range(K))
    conv = conv + p["db"][None, :, None]
    skip = jnp.einsum("cn,bnt->bct", p["sw"], conv) + p["sb"][None, :, None]
    out = conv if first_block else conv + x
    return skip, out


def _ref_forward(x, params, kernel_size):
    pad = (kernel_size - 1) // 2
    skip_acc = 0.0
    for i, p in enumerate(params):
        skip, x = _ref_block(x, p, i == 0, pad)
        skip_acc = skip_acc + skip
    return skip_acc


if __name__ == "__main__":
    key = jax.random.PRNGKey(0)
    B, T = 2, 128
    kernel_size, repeat = 3, 5
    # Residual chain in the PyTorch module requires in_channels == out_channels.
    in_channels = out_channels = N = 16

    k_x, k_p = jax.random.split(key)
    x = jax.random.normal(k_x, (B, N, T), jnp.float32)
    params = init_params(k_p, in_channels, out_channels, kernel_size, repeat)
    chan, pw = pack_params(params, kernel_size)

    out = video_sequential_1d(x, chan, pw, kernel_size=kernel_size)
    out = jax.block_until_ready(out)

    ref = _ref_forward(x, params, kernel_size)
    assert out.shape == (B, out_channels, T)
    assert jnp.allclose(out, ref, rtol=1e-3, atol=1e-3), float(jnp.max(jnp.abs(out - ref)))
    print("KERNEL_OK")
</pallas_src>

<mosaic_0001>
module attributes {stable_mosaic.version = 11 : i64} {
  func.func @kernel(%arg0: i32, %arg1: memref<16x256xf32, #tpu.memory_space<vmem>>, %arg2: memref<5x16x6xf32, #tpu.memory_space<vmem>>, %arg3: memref<5x16x17xf32, #tpu.memory_space<vmem>>, %arg4: memref<16x256xf32, #tpu.memory_space<vmem>>) attributes {dimension_semantics = [#tpu.dimension_semantics<parallel>], iteration_bounds = array<i64: 1>, scalar_prefetch = 0 : i64, scratch_operands = 0 : i64, tpu.core_type = #tpu.core_type<tc>, window_params = [{transform_indices = @transform_0, window_bounds = array<i64: 16, 256>}, {pipeline_mode = #tpu.pipeline_mode<synchronous>, transform_indices = @transform_1, window_bounds = array<i64: 5, 16, 6>}, {pipeline_mode = #tpu.pipeline_mode<synchronous>, transform_indices = @transform_2, window_bounds = array<i64: 5, 16, 17>}, {transform_indices = @transform_3, window_bounds = array<i64: 16, 256>}]} {
    %c0 = arith.constant 0 : index
    %c0_0 = arith.constant 0 : index
    %0 = vector.load %arg1[%c0, %c0_0] : memref<16x256xf32, #tpu.memory_space<vmem>>, vector<16x256xf32>
    %1 = tpu.iota {dimensions = array<i32: 1>} : vector<16x256xi32>
    %c128_i32 = arith.constant 128 : i32
    %c0_i32 = arith.constant 0 : i32
    %2 = arith.cmpi eq, %c128_i32, %c0_i32 : i32
    %c1_i32 = arith.constant 1 : i32
    %3 = arith.select %2, %c1_i32, %c128_i32 : i32
    %4 = vector.broadcast %3 : i32 to vector<16x256xi32>
    %5 = arith.remsi %1, %4 : vector<16x256xi32>
    %c0_i32_1 = arith.constant 0 : i32
    %6 = vector.broadcast %c0_i32_1 : i32 to vector<16x256xi32>
    %7 = arith.cmpi ne, %5, %6 : vector<16x256xi32>
    %c0_i32_2 = arith.constant 0 : i32
    %8 = vector.broadcast %c0_i32_2 : i32 to vector<16x256xi32>
    %9 = arith.cmpi slt, %5, %8 : vector<16x256xi32>
    %c0_i32_3 = arith.constant 0 : i32
    %10 = arith.cmpi slt, %3, %c0_i32_3 : i32
    %11 = vector.broadcast %10 : i1 to vector<16x256xi1>
    %12 = vector.broadcast %11 : vector<16x256xi1> to vector<16x256xi1>
    %13 = arith.xori %9, %12 : vector<16x256xi1>
    %14 = arith.andi %13, %7 : vector<16x256xi1>
    %15 = vector.broadcast %3 : i32 to vector<16x256xi32>
    %16 = arith.addi %5, %15 : vector<16x256xi32>
    %17 = arith.select %14, %16, %5 : vector<16x256xi1>, vector<16x256xi32>
    %c-1_i32 = arith.constant -1 : i32
    %18 = vector.broadcast %c-1_i32 : i32 to vector<16x256xi32>
    %19 = arith.addi %17, %18 : vector<16x256xi32>
    %c0_i32_4 = arith.constant 0 : i32
    %20 = vector.broadcast %c0_i32_4 : i32 to vector<16x256xi32>
    %21 = arith.cmpi sge, %19, %20 : vector<16x256xi32>
    %c-1_i32_5 = arith.constant -1 : i32
    %22 = vector.broadcast %c-1_i32_5 : i32 to vector<16x256xi32>
    %23 = arith.addi %17, %22 : vector<16x256xi32>
    %c128_i32_6 = arith.constant 128 : i32
    %24 = vector.broadcast %c128_i32_6 : i32 to vector<16x256xi32>
    %25 = arith.cmpi slt, %23, %24 : vector<16x256xi32>
    %26 = arith.andi %21, %25 : vector<16x256xi1>
    %c1_i32_7 = arith.constant 1 : i32
    %27 = vector.broadcast %c1_i32_7 : i32 to vector<16x256xi32>
    %28 = arith.addi %17, %27 : vector<16x256xi32>
    %c0_i32_8 = arith.constant 0 : i32
    %29 = vector.broadcast %c0_i32_8 : i32 to vector<16x256xi32>
    %30 = arith.cmpi sge, %28, %29 : vector<16x256xi32>
    %c1_i32_9 = arith.constant 1 : i32
    %31 = vector.broadcast %c1_i32_9 : i32 to vector<16x256xi32>
    %32 = arith.addi %17, %31 : vector<16x256xi32>
    %c128_i32_10 = arith.constant 128 : i32
    %33 = vector.broadcast %c128_i32_10 : i32 to vector<16x256xi32>
    %34 = arith.cmpi slt, %32, %33 : vector<16x256xi32>
    %35 = arith.andi %30, %34 : vector<16x256xi1>
    %cst = arith.constant 0.000000e+00 : f32
    %36 = vector.broadcast %cst : f32 to vector<16x256xf32>
    %c0_11 = arith.constant 0 : index
    %c0_12 = arith.constant 0 : index
    %c0_13 = arith.constant 0 : index
    %37 = vector.load %arg2[%c0_11, %c0_12, %c0_13] : memref<5x16x6xf32, #tpu.memory_space<vmem>>, vector<1x16x6xf32>
    %38 = vector.shape_cast %37 : vector<1x16x6xf32> to vector<16x6xf32>
    %39 = vector.extract_strided_slice %38 {offsets = [0, 3], sizes = [16, 1], strides = [1, 1]} : vector<16x6xf32> to vector<16x1xf32>
    %cst_14 = arith.constant 0.000000e+00 : f32
    %40 = vector.broadcast %cst_14 : f32 to vector<16x256xf32>
    %41 = vector.broadcast %39 : vector<16x1xf32> to vector<16x256xf32>
    %42 = arith.addf %41, %40 : vector<16x256xf32>
    %43 = vector.extract_strided_slice %38 {offsets = [0, 0], sizes = [16, 1], strides = [1, 1]} : vector<16x6xf32> to vector<16x1xf32>
    %c1_i32_15 = arith.constant 1 : i32
    %44 = tpu.dynamic_rotate %0 by %c1_i32_15 dim 1 : vector<16x256xf32>, i32 -> vector<16x256xf32>
    %45 = vector.broadcast %43 : vector<16x1xf32> to vector<16x256xf32>
    %46 = arith.mulf %44, %45 : vector<16x256xf32>
    %cst_16 = arith.constant 0.000000e+00 : f32
    %47 = vector.broadcast %cst_16 : f32 to vector<16x256xf32>
    %48 = arith.select %26, %46, %47 : vector<16x256xi1>, vector<16x256xf32>
    %49 = arith.addf %42, %48 : vector<16x256xf32>
    %50 = vector.extract_strided_slice %38 {offsets = [0, 1], sizes = [16, 1], strides = [1, 1]} : vector<16x6xf32> to vector<16x1xf32>
    %51 = vector.broadcast %50 : vector<16x1xf32> to vector<16x256xf32>
    %52 = arith.mulf %0, %51 : vector<16x256xf32>
    %53 = arith.addf %49, %52 : vector<16x256xf32>
    %54 = vector.extract_strided_slice %38 {offsets = [0, 2], sizes = [16, 1], strides = [1, 1]} : vector<16x6xf32> to vector<16x1xf32>
    %c255_i32 = arith.constant 255 : i32
    %55 = tpu.dynamic_rotate %0 by %c255_i32 dim 1 : vector<16x256xf32>, i32 -> vector<16x256xf32>
    %56 = vector.broadcast %54 : vector<16x1xf32> to vector<16x256xf32>
    %57 = arith.mulf %55, %56 : vector<16x256xf32>
    %cst_17 = arith.constant 0.000000e+00 : f32
    %58 = vector.broadcast %cst_17 : f32 to vector<16x256xf32>
    %59 = arith.select %35, %57, %58 : vector<16x256xi1>, vector<16x256xf32>
    %60 = arith.addf %53, %59 : vector<16x256xf32>
    %c0_18 = arith.constant 0 : index
    %c0_19 = arith.constant 0 : index
    %c0_20 = arith.constant 0 : index
    %61 = vector.load %arg3[%c0_18, %c0_19, %c0_20] : memref<5x16x17xf32, #tpu.memory_space<vmem>>, vector<1x16x17xf32>
    %62 = vector.shape_cast %61 : vector<1x16x17xf32> to vector<16x17xf32>
    %63 = vector.extract_strided_slice %62 {offsets = [0, 0], sizes = [16, 16], strides = [1, 1]} : vector<16x17xf32> to vector<16x16xf32>
    %cst_21 = arith.constant dense<0.000000e+00> : vector<16x256xf32>
    %64 = tpu.matmul %63, %60, %cst_21 {dimension_numbers = #tpu.dot_dimension_numbers<[1], [0], [0], [1], [0, 0, 1, 1], [], []>} : vector<16x16xf32>, vector<16x256xf32>, vector<16x256xf32> -> vector<16x256xf32>
    %65 = vector.extract_strided_slice %62 {offsets = [0, 16], sizes = [16, 1], strides = [1, 1]} : vector<16x17xf32> to vector<16x1xf32>
    %66 = vector.broadcast %65 : vector<16x1xf32> to vector<16x256xf32>
    %67 = arith.addf %64, %66 : vector<16x256xf32>
    %68 = arith.addf %36, %67 : vector<16x256xf32>
    %c1 = arith.constant 1 : index
    %c0_22 = arith.constant 0 : index
    %c0_23 = arith.constant 0 : index
    %69 = vector.load %arg2[%c1, %c0_22, %c0_23] : memref<5x16x6xf32, #tpu.memory_space<vmem>>, vector<1x16x6xf32>
    %70 = vector.shape_cast %69 : vector<1x16x6xf32> to vector<16x6xf32>
    %cst_24 = arith.constant 0.000000e+00 : f32
    %71 = vector.broadcast %cst_24 : f32 to vector<16x256xf32>
    %72 = arith.maximumf %60, %71 : vector<16x256xf32>
    %73 = vector.extract_strided_slice %70 {offsets = [0, 4], sizes = [16, 1], strides = [1, 1]} : vector<16x6xf32> to vector<16x1xf32>
    %74 = vector.broadcast %73 : vector<16x1xf32> to vector<16x256xf32>
    %75 = arith.mulf %72, %74 : vector<16x256xf32>
    %76 = vector.extract_strided_slice %70 {offsets = [0, 5], sizes = [16, 1], strides = [1, 1]} : vector<16x6xf32> to vector<16x1xf32>
    %77 = vector.broadcast %76 : vector<16x1xf32> to vector<16x256xf32>
    %78 = arith.addf %75, %77 : vector<16x256xf32>
    %79 = vector.extract_strided_slice %70 {offsets = [0, 3], sizes = [16, 1], strides = [1, 1]} : vector<16x6xf32> to vector<16x1xf32>
    %cst_25 = arith.constant 0.000000e+00 : f32
    %80 = vector.broadcast %cst_25 : f32 to vector<16x256xf32>
    %81 = vector.broadcast %79 : vector<16x1xf32> to vector<16x256xf32>
    %82 = arith.addf %81, %80 : vector<16x256xf32>
    %83 = vector.extract_strided_slice %70 {offsets = [0, 0], sizes = [16, 1], strides = [1, 1]} : vector<16x6xf32> to vector<16x1xf32>
    %c1_i32_26 = arith.constant 1 : i32
    %84 = tpu.dynamic_rotate %78 by %c1_i32_26 dim 1 : vector<16x256xf32>, i32 -> vector<16x256xf32>
    %85 = vector.broadcast %83 : vector<16x1xf32> to vector<16x256xf32>
    %86 = arith.mulf %84, %85 : vector<16x256xf32>
    %cst_27 = arith.constant 0.000000e+00 : f32
    %87 = vector.broadcast %cst_27 : f32 to vector<16x256xf32>
    %88 = arith.select %26, %86, %87 : vector<16x256xi1>, vector<16x256xf32>
    %89 = arith.addf %82, %88 : vector<16x256xf32>
    %90 = vector.extract_strided_slice %70 {offsets = [0, 1], sizes = [16, 1], strides = [1, 1]} : vector<16x6xf32> to vector<16x1xf32>
    %91 = vector.broadcast %90 : vector<16x1xf32> to vector<16x256xf32>
    %92 = arith.mulf %78, %91 : vector<16x256xf32>
    %93 = arith.addf %89, %92 : vector<16x256xf32>
    %94 = vector.extract_strided_slice %70 {offsets = [0, 2], sizes = [16, 1], strides = [1, 1]} : vector<16x6xf32> to vector<16x1xf32>
    %c255_i32_28 = arith.constant 255 : i32
    %95 = tpu.dynamic_rotate %78 by %c255_i32_28 dim 1 : vector<16x256xf32>, i32 -> vector<16x256xf32>
    %96 = vector.broadcast %94 : vector<16x1xf32> to vector<16x256xf32>
    %97 = arith.mulf %95, %96 : vector<16x256xf32>
    %cst_29 = arith.constant 0.000000e+00 : f32
    %98 = vector.broadcast %cst_29 : f32 to vector<16x256xf32>
    %99 = arith.select %35, %97, %98 : vector<16x256xi1>, vector<16x256xf32>
    %100 = arith.addf %93, %99 : vector<16x256xf32>
    %c1_30 = arith.constant 1 : index
    %c0_31 = arith.constant 0 : index
    %c0_32 = arith.constant 0 : index
    %101 = vector.load %arg3[%c1_30, %c0_31, %c0_32] : memref<5x16x17xf32, #tpu.memory_space<vmem>>, vector<1x16x17xf32>
    %102 = vector.shape_cast %101 : vector<1x16x17xf32> to vector<16x17xf32>
    %103 = vector.extract_strided_slice %102 {offsets = [0, 0], sizes = [16, 16], strides = [1, 1]} : vector<16x17xf32> to vector<16x16xf32>
    %cst_33 = arith.constant dense<0.000000e+00> : vector<16x256xf32>
    %104 = tpu.matmul %103, %100, %cst_33 {dimension_numbers = #tpu.dot_dimension_numbers<[1], [0], [0], [1], [0, 0, 1, 1], [], []>} : vector<16x16xf32>, vector<16x256xf32>, vector<16x256xf32> -> vector<16x256xf32>
    %105 = vector.extract_strided_slice %102 {offsets = [0, 16], sizes = [16, 1], strides = [1, 1]} : vector<16x17xf32> to vector<16x1xf32>
    %106 = vector.broadcast %105 : vector<16x1xf32> to vector<16x256xf32>
    %107 = arith.addf %104, %106 : vector<16x256xf32>
    %108 = arith.addf %68, %107 : vector<16x256xf32>
    %109 = arith.addf %100, %60 : vector<16x256xf32>
    %c2 = arith.constant 2 : index
    %c0_34 = arith.constant 0 : index
    %c0_35 = arith.constant 0 : index
    %110 = vector.load %arg2[%c2, %c0_34, %c0_35] : memref<5x16x6xf32, #tpu.memory_space<vmem>>, vector<1x16x6xf32>
    %111 = vector.shape_cast %110 : vector<1x16x6xf32> to vector<16x6xf32>
    %cst_36 = arith.constant 0.000000e+00 : f32
    %112 = vector.broadcast %cst_36 : f32 to vector<16x256xf32>
    %113 = arith.maximumf %109, %112 : vector<16x256xf32>
    %114 = vector.extract_strided_slice %111 {offsets = [0, 4], sizes = [16, 1], strides = [1, 1]} : vector<16x6xf32> to vector<16x1xf32>
    %115 = vector.broadcast %114 : vector<16x1xf32> to vector<16x256xf32>
    %116 = arith.mulf %113, %115 : vector<16x256xf32>
    %117 = vector.extract_strided_slice %111 {offsets = [0, 5], sizes = [16, 1], strides = [1, 1]} : vector<16x6xf32> to vector<16x1xf32>
    %118 = vector.broadcast %117 : vector<16x1xf32> to vector<16x256xf32>
    %119 = arith.addf %116, %118 : vector<16x256xf32>
    %120 = vector.extract_strided_slice %111 {offsets = [0, 3], sizes = [16, 1], strides = [1, 1]} : vector<16x6xf32> to vector<16x1xf32>
    %cst_37 = arith.constant 0.000000e+00 : f32
    %121 = vector.broadcast %cst_37 : f32 to vector<16x256xf32>
    %122 = vector.broadcast %120 : vector<16x1xf32> to vector<16x256xf32>
    %123 = arith.addf %122, %121 : vector<16x256xf32>
    %124 = vector.extract_strided_slice %111 {offsets = [0, 0], sizes = [16, 1], strides = [1, 1]} : vector<16x6xf32> to vector<16x1xf32>
    %c1_i32_38 = arith.constant 1 : i32
    %125 = tpu.dynamic_rotate %119 by %c1_i32_38 dim 1 : vector<16x256xf32>, i32 -> vector<16x256xf32>
    %126 = vector.broadcast %124 : vector<16x1xf32> to vector<16x256xf32>
    %127 = arith.mulf %125, %126 : vector<16x256xf32>
    %cst_39 = arith.constant 0.000000e+00 : f32
    %128 = vector.broadcast %cst_39 : f32 to vector<16x256xf32>
    %129 = arith.select %26, %127, %128 : vector<16x256xi1>, vector<16x256xf32>
    %130 = arith.addf %123, %129 : vector<16x256xf32>
    %131 = vector.extract_strided_slice %111 {offsets = [0, 1], sizes = [16, 1], strides = [1, 1]} : vector<16x6xf32> to vector<16x1xf32>
    %132 = vector.broadcast %131 : vector<16x1xf32> to vector<16x256xf32>
    %133 = arith.mulf %119, %132 : vector<16x256xf32>
    %134 = arith.addf %130, %133 : vector<16x256xf32>
    %135 = vector.extract_strided_slice %111 {offsets = [0, 2], sizes = [16, 1], strides = [1, 1]} : vector<16x6xf32> to vector<16x1xf32>
    %c255_i32_40 = arith.constant 255 : i32
    %136 = tpu.dynamic_rotate %119 by %c255_i32_40 dim 1 : vector<16x256xf32>, i32 -> vector<16x256xf32>
    %137 = vector.broadcast %135 : vector<16x1xf32> to vector<16x256xf32>
    %138 = arith.mulf %136, %137 : vector<16x256xf32>
    %cst_41 = arith.constant 0.000000e+00 : f32
    %139 = vector.broadcast %cst_41 : f32 to vector<16x256xf32>
    %140 = arith.select %35, %138, %139 : vector<16x256xi1>, vector<16x256xf32>
    %141 = arith.addf %134, %140 : vector<16x256xf32>
    %c2_42 = arith.constant 2 : index
    %c0_43 = arith.constant 0 : index
    %c0_44 = arith.constant 0 : index
    %142 = vector.load %arg3[%c2_42, %c0_43, %c0_44] : memref<5x16x17xf32, #tpu.memory_space<vmem>>, vector<1x16x17xf32>
    %143 = vector.shape_cast %142 : vector<1x16x17xf32> to vector<16x17xf32>
    %144 = vector.extract_strided_slice %143 {offsets = [0, 0], sizes = [16, 16], strides = [1, 1]} : vector<16x17xf32> to vector<16x16xf32>
    %cst_45 = arith.constant dense<0.000000e+00> : vector<16x256xf32>
    %145 = tpu.matmul %144, %141, %cst_45 {dimension_numbers = #tpu.dot_dimension_numbers<[1], [0], [0], [1], [0, 0, 1, 1], [], []>} : vector<16x16xf32>, vector<16x256xf32>, vector<16x256xf32> -> vector<16x256xf32>
    %146 = vector.extract_strided_slice %143 {offsets = [0, 16], sizes = [16, 1], strides = [1, 1]} : vector<16x17xf32> to vector<16x1xf32>
    %147 = vector.broadcast %146 : vector<16x1xf32> to vector<16x256xf32>
    %148 = arith.addf %145, %147 : vector<16x256xf32>
    %149 = arith.addf %108, %148 : vector<16x256xf32>
    %150 = arith.addf %141, %109 : vector<16x256xf32>
    %c3 = arith.constant 3 : index
    %c0_46 = arith.constant 0 : index
    %c0_47 = arith.constant 0 : index
    %151 = vector.load %arg2[%c3, %c0_46, %c0_47] : memref<5x16x6xf32, #tpu.memory_space<vmem>>, vector<1x16x6xf32>
    %152 = vector.shape_cast %151 : vector<1x16x6xf32> to vector<16x6xf32>
    %cst_48 = arith.constant 0.000000e+00 : f32
    %153 = vector.broadcast %cst_48 : f32 to vector<16x256xf32>
    %154 = arith.maximumf %150, %153 : vector<16x256xf32>
    %155 = vector.extract_strided_slice %152 {offsets = [0, 4], sizes = [16, 1], strides = [1, 1]} : vector<16x6xf32> to vector<16x1xf32>
    %156 = vector.broadcast %155 : vector<16x1xf32> to vector<16x256xf32>
    %157 = arith.mulf %154, %156 : vector<16x256xf32>
    %158 = vector.extract_strided_slice %152 {offsets = [0, 5], sizes = [16, 1], strides = [1, 1]} : vector<16x6xf32> to vector<16x1xf32>
    %159 = vector.broadcast %158 : vector<16x1xf32> to vector<16x256xf32>
    %160 = arith.addf %157, %159 : vector<16x256xf32>
    %161 = vector.extract_strided_slice %152 {offsets = [0, 3], sizes = [16, 1], strides = [1, 1]} : vector<16x6xf32> to vector<16x1xf32>
    %cst_49 = arith.constant 0.000000e+00 : f32
    %162 = vector.broadcast %cst_49 : f32 to vector<16x256xf32>
    %163 = vector.broadcast %161 : vector<16x1xf32> to vector<16x256xf32>
    %164 = arith.addf %163, %162 : vector<16x256xf32>
    %165 = vector.extract_strided_slice %152 {offsets = [0, 0], sizes = [16, 1], strides = [1, 1]} : vector<16x6xf32> to vector<16x1xf32>
    %c1_i32_50 = arith.constant 1 : i32
    %166 = tpu.dynamic_rotate %160 by %c1_i32_50 dim 1 : vector<16x256xf32>, i32 -> vector<16x256xf32>
    %167 = vector.broadcast %165 : vector<16x1xf32> to vector<16x256xf32>
    %168 = arith.mulf %166, %167 : vector<16x256xf32>
    %cst_51 = arith.constant 0.000000e+00 : f32
    %169 = vector.broadcast %cst_51 : f32 to vector<16x256xf32>
    %170 = arith.select %26, %168, %169 : vector<16x256xi1>, vector<16x256xf32>
    %171 = arith.addf %164, %170 : vector<16x256xf32>
    %172 = vector.extract_strided_slice %152 {offsets = [0, 1], sizes = [16, 1], strides = [1, 1]} : vector<16x6xf32> to vector<16x1xf32>
    %173 = vector.broadcast %172 : vector<16x1xf32> to vector<16x256xf32>
    %174 = arith.mulf %160, %173 : vector<16x256xf32>
    %175 = arith.addf %171, %174 : vector<16x256xf32>
    %176 = vector.extract_strided_slice %152 {offsets = [0, 2], sizes = [16, 1], strides = [1, 1]} : vector<16x6xf32> to vector<16x1xf32>
    %c255_i32_52 = arith.constant 255 : i32
    %177 = tpu.dynamic_rotate %160 by %c255_i32_52 dim 1 : vector<16x256xf32>, i32 -> vector<16x256xf32>
    %178 = vector.broadcast %176 : vector<16x1xf32> to vector<16x256xf32>
    %179 = arith.mulf %177, %178 : vector<16x256xf32>
    %cst_53 = arith.constant 0.000000e+00 : f32
    %180 = vector.broadcast %cst_53 : f32 to vector<16x256xf32>
    %181 = arith.select %35, %179, %180 : vector<16x256xi1>, vector<16x256xf32>
    %182 = arith.addf %175, %181 : vector<16x256xf32>
    %c3_54 = arith.constant 3 : index
    %c0_55 = arith.constant 0 : index
    %c0_56 = arith.constant 0 : index
    %183 = vector.load %arg3[%c3_54, %c0_55, %c0_56] : memref<5x16x17xf32, #tpu.memory_space<vmem>>, vector<1x16x17xf32>
    %184 = vector.shape_cast %183 : vector<1x16x17xf32> to vector<16x17xf32>
    %185 = vector.extract_strided_slice %184 {offsets = [0, 0], sizes = [16, 16], strides = [1, 1]} : vector<16x17xf32> to vector<16x16xf32>
    %cst_57 = arith.constant dense<0.000000e+00> : vector<16x256xf32>
    %186 = tpu.matmul %185, %182, %cst_57 {dimension_numbers = #tpu.dot_dimension_numbers<[1], [0], [0], [1], [0, 0, 1, 1], [], []>} : vector<16x16xf32>, vector<16x256xf32>, vector<16x256xf32> -> vector<16x256xf32>
    %187 = vector.extract_strided_slice %184 {offsets = [0, 16], sizes = [16, 1], strides = [1, 1]} : vector<16x17xf32> to vector<16x1xf32>
    %188 = vector.broadcast %187 : vector<16x1xf32> to vector<16x256xf32>
    %189 = arith.addf %186, %188 : vector<16x256xf32>
    %190 = arith.addf %149, %189 : vector<16x256xf32>
    %191 = arith.addf %182, %150 : vector<16x256xf32>
    %c4 = arith.constant 4 : index
    %c0_58 = arith.constant 0 : index
    %c0_59 = arith.constant 0 : index
    %192 = vector.load %arg2[%c4, %c0_58, %c0_59] : memref<5x16x6xf32, #tpu.memory_space<vmem>>, vector<1x16x6xf32>
    %193 = vector.shape_cast %192 : vector<1x16x6xf32> to vector<16x6xf32>
    %cst_60 = arith.constant 0.000000e+00 : f32
    %194 = vector.broadcast %cst_60 : f32 to vector<16x256xf32>
    %195 = arith.maximumf %191, %194 : vector<16x256xf32>
    %196 = vector.extract_strided_slice %193 {offsets = [0, 4], sizes = [16, 1], strides = [1, 1]} : vector<16x6xf32> to vector<16x1xf32>
    %197 = vector.broadcast %196 : vector<16x1xf32> to vector<16x256xf32>
    %198 = arith.mulf %195, %197 : vector<16x256xf32>
    %199 = vector.extract_strided_slice %193 {offsets = [0, 5], sizes = [16, 1], strides = [1, 1]} : vector<16x6xf32> to vector<16x1xf32>
    %200 = vector.broadcast %199 : vector<16x1xf32> to vector<16x256xf32>
    %201 = arith.addf %198, %200 : vector<16x256xf32>
    %202 = vector.extract_strided_slice %193 {offsets = [0, 3], sizes = [16, 1], strides = [1, 1]} : vector<16x6xf32> to vector<16x1xf32>
    %cst_61 = arith.constant 0.000000e+00 : f32
    %203 = vector.broadcast %cst_61 : f32 to vector<16x256xf32>
    %204 = vector.broadcast %202 : vector<16x1xf32> to vector<16x256xf32>
    %205 = arith.addf %204, %203 : vector<16x256xf32>
    %206 = vector.extract_strided_slice %193 {offsets = [0, 0], sizes = [16, 1], strides = [1, 1]} : vector<16x6xf32> to vector<16x1xf32>
    %c1_i32_62 = arith.constant 1 : i32
    %207 = tpu.dynamic_rotate %201 by %c1_i32_62 dim 1 : vector<16x256xf32>, i32 -> vector<16x256xf32>
    %208 = vector.broadcast %206 : vector<16x1xf32> to vector<16x256xf32>
    %209 = arith.mulf %207, %208 : vector<16x256xf32>
    %cst_63 = arith.constant 0.000000e+00 : f32
    %210 = vector.broadcast %cst_63 : f32 to vector<16x256xf32>
    %211 = arith.select %26, %209, %210 : vector<16x256xi1>, vector<16x256xf32>
    %212 = arith.addf %205, %211 : vector<16x256xf32>
    %213 = vector.extract_strided_slice %193 {offsets = [0, 1], sizes = [16, 1], strides = [1, 1]} : vector<16x6xf32> to vector<16x1xf32>
    %214 = vector.broadcast %213 : vector<16x1xf32> to vector<16x256xf32>
    %215 = arith.mulf %201, %214 : vector<16x256xf32>
    %216 = arith.addf %212, %215 : vector<16x256xf32>
    %217 = vector.extract_strided_slice %193 {offsets = [0, 2], sizes = [16, 1], strides = [1, 1]} : vector<16x6xf32> to vector<16x1xf32>
    %c255_i32_64 = arith.constant 255 : i32
    %218 = tpu.dynamic_rotate %201 by %c255_i32_64 dim 1 : vector<16x256xf32>, i32 -> vector<16x256xf32>
    %219 = vector.broadcast %217 : vector<16x1xf32> to vector<16x256xf32>
    %220 = arith.mulf %218, %219 : vector<16x256xf32>
    %cst_65 = arith.constant 0.000000e+00 : f32
    %221 = vector.broadcast %cst_65 : f32 to vector<16x256xf32>
    %222 = arith.select %35, %220, %221 : vector<16x256xi1>, vector<16x256xf32>
    %223 = arith.addf %216, %222 : vector<16x256xf32>
    %c4_66 = arith.constant 4 : index
    %c0_67 = arith.constant 0 : index
    %c0_68 = arith.constant 0 : index
    %224 = vector.load %arg3[%c4_66, %c0_67, %c0_68] : memref<5x16x17xf32, #tpu.memory_space<vmem>>, vector<1x16x17xf32>
    %225 = vector.shape_cast %224 : vector<1x16x17xf32> to vector<16x17xf32>
    %226 = vector.extract_strided_slice %225 {offsets = [0, 0], sizes = [16, 16], strides = [1, 1]} : vector<16x17xf32> to vector<16x16xf32>
    %cst_69 = arith.constant dense<0.000000e+00> : vector<16x256xf32>
    %227 = tpu.matmul %226, %223, %cst_69 {dimension_numbers = #tpu.dot_dimension_numbers<[1], [0], [0], [1], [0, 0, 1, 1], [], []>} : vector<16x16xf32>, vector<16x256xf32>, vector<16x256xf32> -> vector<16x256xf32>
    %228 = vector.extract_strided_slice %225 {offsets = [0, 16], sizes = [16, 1], strides = [1, 1]} : vector<16x17xf32> to vector<16x1xf32>
    %229 = vector.broadcast %228 : vector<16x1xf32> to vector<16x256xf32>
    %230 = arith.addf %227, %229 : vector<16x256xf32>
    %231 = arith.addf %190, %230 : vector<16x256xf32>
    %c0_70 = arith.constant 0 : index
    %c0_71 = arith.constant 0 : index
    %232 = vector.load %arg4[%c0_70, %c0_71] : memref<16x256xf32, #tpu.memory_space<vmem>>, vector<16x256xf32>
    tpu.vector_store %arg4[%c0_70, %c0_71], %231 {strides = array<i32>} : memref<16x256xf32, #tpu.memory_space<vmem>>, vector<16x256xf32>,
    return
  }
  func.func @transform_0(%arg0: i32) -> (i32, i32) {
    %c0_i32 = arith.constant 0 : i32
    %c0_i32_0 = arith.constant 0 : i32
    return %c0_i32, %arg0 : i32, i32
  }
  func.func @transform_1(%arg0: i32) -> (i32, i32, i32) {
    %c0_i32 = arith.constant 0 : i32
    %c0_i32_0 = arith.constant 0 : i32
    %c0_i32_1 = arith.constant 0 : i32
    %c0_i32_2 = arith.constant 0 : i32
    return %c0_i32, %c0_i32_0, %c0_i32_1 : i32, i32, i32
  }
  func.func @transform_2(%arg0: i32) -> (i32, i32, i32) {
    %c0_i32 = arith.constant 0 : i32
    %c0_i32_0 = arith.constant 0 : i32
    %c0_i32_1 = arith.constant 0 : i32
    %c0_i32_2 = arith.constant 0 : i32
    return %c0_i32, %c0_i32_0, %c0_i32_1 : i32, i32, i32
  }
  func.func @transform_3(%arg0: i32) -> (i32, i32) {
    %c0_i32 = arith.constant 0 : i32
    %c0_i32_0 = arith.constant 0 : i32
    return %c0_i32, %arg0 : i32, i32
  }
}

</mosaic_0001>

<bundles_post_ra>
// kernel: tpu_custom_call.1
= control target key start
LH: loop header
LB: loop body
LE: loop exit
PB: predicated region body
PF: predicated region fallthrough
CT: control target
= control target key end

     0   :  { %v1281_v1 = vmov 0   ;;  %v1282_v2 = vmov 3   ;;  %s1831_s0 = inlined_call_operand.vmem [shape: f32[16,256], index: 0, kind: input, shape index: {}]   ;;  %s1832_s1 = inlined_call_operand.vmem [shape: f32[5,16,6], index: 1, kind: input, shape index: {}]   ;;  %s1833_s2 = inlined_call_operand.vmem [shape: f32[5,16,17], index: 2, kind: input, shape index: {}]   ;;  %s1834_s3 = inlined_call_operand.hbm [shape: f32[16,256], index: 3, kind: output, shape index: {}]  }
   0x1   :  { %v63_v0 = vld [vmem:[%s1832_s1 + $0x8] sm:$0xff]  ;;  %1215 = vset.pattern.permute.xlu0 %v1281_v1  ;;  %1216 = vset.pattern.permute.xlu1 %v1282_v2  ;;  %v62_v3 = vld [vmem:[%s1832_s1] sm:$0xff] }
   0x2   :  { %71 = vperm.xlu1 %1216, %v63_v0   ;;  %94 = vperm.xlu0 %1215, %v63_v0  }
   0x3   :  { %8 = vsyncpa [#allocation3], 0  ;;  %v1283_v4 = vmov 1   ;;  %v1326_v5 = vld [vmem:[%s1831_s0 + $0x10] sm:$0xff]  ;;  %v1331_v6 = vld [vmem:[%s1831_s0 + $0x18] sm:$0xff]  ;;  %s1284_s20 = smov 1   ;;  %v19_v14 = vlaneseq }
   0x4   :  { %v1285_v7 = vmov 2   ;;  %v1342_v8 = vld [vmem:[%s1831_s0] sm:$0xff]  ;;  %v1350_v9 = vld [vmem:[%s1831_s0 + $0x8] sm:$0xff]  ;;  %v1286_v10 = vmov 4   ;;  %s1287_s25 = smov 127   ;;  %v1174_v11 = vld [vmem:[%s1832_s1 + $0x10] sm:$0xff] }
   0x5   :  { %v1175_v12 = vld [vmem:[%s1832_s1 + $0x18] sm:$0xff]  ;;  %v1288_v13 = vmov 5   ;;  %v1379_v17 = vand.u32 127, %v19_v14  ;;  %vm170_vm6 = vcmask 130048  }
   0x6   :  { %1217 = vset.pattern.permute.xlu1 %v1283_v4  ;;  %90 = vperm.xlu0 %1215, %v62_v3  }
   0x7   :  { %114 = vperm.xlu1 %1217, %v63_v0   ;;  %v21_v20 = vadd.s32 128, %v1379_v17  ;;  %vm84_vm0 = vcmp.lt.s32.totalorder %v1379_v17, 1  ;;  %v1384_v26 = vadd.s32 4294967295, %v1379_v17  ;;  %v1399_v38 = vadd.s32 1, %v1379_v17 }
   0x8   :  { %vm133_vm3 = vcmp.lt.s32.totalorder %v1379_v17, 127 }
   0x9   :  { %v33_v23 = vand.u32 127, %v21_v20  ;;  %vm48_vm1 = vcmp.ge.s32.totalorder %v1384_v26, 0  ;;  %vm58_vm4 = vcmp.lt.s32.totalorder %v1399_v38, 128 }
   0xa   :  { %78 = vrot.lane.b32.xlu0 %v1326_v5, %s1284_s20 }
   0xb   :  { %82 = vrot.lane.b32.xlu1 %v1331_v6, %s1284_s20  ;;  %1218 = vset.pattern.permute.xlu0 %v1285_v7  ;;  %v1386_v27 = vadd.s32 4294967295, %v33_v23  ;;  %v1401_v39 = vadd.s32 1, %v33_v23 }
   0xc   :  { %1219 = vset.pattern.permute.xlu1 %v1282_v2 }
   0xd   :  { %vm49_vm2 = vcmp.ge.s32.totalorder %v1386_v27, 0  ;;  %vm59_vm5 = vcmp.lt.s32.totalorder %v1401_v39, 128 }
   0xe   :  { %143 = vperm.xlu0 %1218, %v63_v0  }
   0xf   :  { %66 = vperm.xlu1 %1219, %v62_v3  }
  0x12   :  { %76 = vrot.lane.b32.xlu0 %v1342_v8, %s1284_s20 }
  0x13   :  { %1220 = vset.pattern.permute.xlu1 %v1283_v4 }
  0x14   :  { %110 = vperm.xlu1 %1220, %v62_v3  }
  0x16   :  { %139 = vperm.xlu0 %1218, %v62_v3  }
  0x18   :  { %80 = vrot.lane.b32.xlu1 %v1350_v9, %s1284_s20 }
  0x19   :  { %1221 = vset.pattern.permute.xlu1 %v1286_v10 }
  0x1a   :  { %131 = vrot.lane.b32.xlu0 %v1331_v6, %s1287_s25 }
  0x1b   :  { %1222 = vset.pattern.permute.xlu0 %v1286_v10 }
  0x1c   :  { %127 = vrot.lane.b32.xlu1 %v1326_v5, %s1287_s25 }
  0x1e   :  { %129 = vrot.lane.b32.xlu0 %v1350_v9, %s1287_s25 }
  0x20   :  { %125 = vrot.lane.b32.xlu1 %v1342_v8, %s1287_s25 }
  0x22   :  { %265 = vperm.xlu0 %1222, %v1174_v11  }
  0x24   :  { %270 = vperm.xlu1 %1221, %v1175_v12  }
  0x26   :  { %1224 = vset.pattern.permute.xlu0 %v1281_v1 }
  0x27   :  { %316 = vperm.xlu0 %1224, %v1175_v12  }
  0x28   :  { %1223 = vset.pattern.permute.xlu1 %v1288_v13 }
  0x29   :  { %282 = vperm.xlu1 %1223, %v1175_v12  }
  0x2b   :  { %1227 = vset.pattern.permute.xlu0 %v1283_v4 }
  0x2c   :  { %336 = vperm.xlu0 %1227, %v1175_v12  }
  0x2d   :  { %278 = vperm.xlu1 %1223, %v1174_v11  }
  0x30   :  { %1228 = vset.pattern.permute.xlu0 %v1285_v7 }
  0x31   :  { %1225 = vset.pattern.permute.xlu1 %v1281_v1  ;;  %364 = vperm.xlu0 %1228, %v1175_v12  }
  0x32   :  { %312 = vperm.xlu1 %1225, %v1174_v11  }
  0x35   :  { %360 = vperm.xlu0 %1228, %v1174_v11  }
  0x36   :  { %1226 = vset.pattern.permute.xlu1 %v1282_v2 }
  0x37   :  { %294 = vperm.xlu1 %1226, %v1175_v12  }
  0x39   :  { %1231 = vset.pattern.permute.xlu0 %v1286_v10 }
  0x3b   :  { %290 = vperm.xlu1 %1226, %v1174_v11  }
  0x3f   :  { %1229 = vset.pattern.permute.xlu1 %v1283_v4 }
  0x40   :  { %332 = vperm.xlu1 %1229, %v1174_v11  }
  0x44   :  { %1230 = vset.pattern.permute.xlu1 %v1286_v10 }
  0x7d   :  { %v72_v15 = vpop.permute.xlu1 %71  ;;  %v95_v16 = vpop.permute.xlu0 %94 }
  0x81   :  { %v91_v18 = vpop.permute.xlu0 %90 }
  0x82   :  { %v115_v19 = vpop.permute.xlu1 %114 }
  0x83   :  { %v119_v50 = vmul.f32 %v115_v19, %v1326_v5  ;;  %v120_v51 = vmul.f32 %v115_v19, %v1331_v6 }
  0x85   :  { %v79_v21 = vpop.permute.xlu0 %78 }
  0x86   :  { %v83_v22 = vpop.permute.xlu1 %82 }
  0x87   :  { %v86_v28 = vsel %vm84_vm0, %v79_v21, %v83_v22  ;;  %v88_v29 = vsel %vm84_vm0, %v83_v22, %v79_v21 }
  0x88   :  { %v99_v31 = vmul.f32 %v95_v16, %v88_v29  ;;  %v100_v32 = vmul.f32 %v95_v16, %v86_v28 }
  0x89   :  { %v144_v24 = vpop.permute.xlu0 %143 }
  0x8a   :  { %v67_v25 = vpop.permute.xlu1 %66  ;;  %v103_v35 = vsel %vm48_vm1, %v99_v31, 0.0  ;;  %v104_v36 = vsel %vm49_vm2, %v100_v32, 0.0 }
  0x8b   :  { %v107_v45 = vadd.f32 %v103_v35, %v72_v15  ;;  %v108_v46 = vadd.f32 %v104_v36, %v72_v15 }
  0x8d   :  { %v77_v30 = vpop.permute.xlu0 %76  ;;  %v123_v59 = vadd.f32 %v119_v50, %v107_v45  ;;  %v124_v60 = vadd.f32 %v120_v51, %v108_v46 }
  0x8f   :  { %v111_v33 = vpop.permute.xlu1 %110 }
  0x90   :  { %v117_v61 = vmul.f32 %v111_v33, %v1342_v8  ;;  %v118_v62 = vmul.f32 %v111_v33, %v1350_v9 }
  0x91   :  { %v140_v34 = vpop.permute.xlu0 %139 }
  0x93   :  { %v81_v37 = vpop.permute.xlu1 %80 }
  0x94   :  { %v85_v40 = vsel %vm84_vm0, %v77_v30, %v81_v37  ;;  %v87_v41 = vsel %vm84_vm0, %v81_v37, %v77_v30 }
  0x95   :  { %v97_v42 = vmul.f32 %v91_v18, %v87_v41  ;;  %v98_v43 = vmul.f32 %v91_v18, %v85_v40  ;;  %v132_v44 = vpop.permute.xlu0 %131  ;;  %v1289_v40 = vmov 0.0   ;;  %v1470_v41 = vld [vmem:[%s1833_s2 + $0x8] sm:$0xff] }
  0x96   :  { %245 = vmatprep.mubr.f32.mxu1 %v1289_v40  ;;  %239 = vmatprep.mubr.f32.mxu0 %v1289_v40 }
  0x97   :  { %v101_v47 = vsel %vm48_vm1, %v97_v42, 0.0  ;;  %v102_v48 = vsel %vm49_vm2, %v98_v43, 0.0  ;;  %v128_v49 = vpop.permute.xlu1 %127  ;;  %v1180_v43 = vld [vmem:[%s1832_s1 + $0x20] sm:$0xff] }
  0x98   :  { %v135_v52 = vsel %vm133_vm3, %v128_v49, %v132_v44  ;;  %v137_v53 = vsel %vm133_vm3, %v132_v44, %v128_v49  ;;  %v105_v57 = vadd.f32 %v101_v47, %v67_v25  ;;  %v106_v58 = vadd.f32 %v102_v48, %v67_v25  ;;  %v1181_v44 = vld [vmem:[%s1832_s1 + $0x28] sm:$0xff] }
  0x99   :  { %v148_v54 = vmul.f32 %v144_v24, %v135_v52  ;;  %v149_v55 = vmul.f32 %v144_v24, %v137_v53  ;;  %v130_v56 = vpop.permute.xlu0 %129 }
  0x9a   :  { %v122_v9 = vadd.f32 %v118_v62, %v106_v58  ;;  %v121_v15 = vadd.f32 %v117_v61, %v105_v57 }
  0x9b   :  { %v152_v63 = vsel %vm58_vm4, %v148_v54, 0.0  ;;  %v153_v0 = vsel %vm59_vm5, %v149_v55, 0.0  ;;  %v126_v3 = vpop.permute.xlu1 %125 }
  0x9c   :  { %v1426_v5 = vadd.f32 %v152_v63, %v123_v59  ;;  %v1428_v6 = vadd.f32 %v153_v0, %v124_v60  ;;  %v134_v11 = vsel %vm133_vm3, %v126_v3, %v130_v56  ;;  %v136_v12 = vsel %vm133_vm3, %v130_v56, %v126_v3 }
  0x9d   :  { %v146_v8 = vmul.f32 %v140_v34, %v134_v11  ;;  %v147_v14 = vmul.f32 %v140_v34, %v136_v12  ;;  %v266_v30 = vpop.permute.xlu0 %265 }
  0x9e   :  { %203 = vmatprep.subr.mxu0 %v1428_v6  ;;  %1198 = vmatprep.subr.mxu1 %v1428_v6  ;;  %v261_v20 = vmax.f32 %v1426_v5, 0.0  ;;  %v262_v23 = vmax.f32 %v1428_v6, 0.0 }
  0x9f   :  { %v150_v16 = vsel %vm58_vm4, %v146_v8, 0.0  ;;  %v151_v18 = vsel %vm59_vm5, %v147_v14, 0.0  ;;  %v271_v19 = vpop.permute.xlu1 %270  ;;  %204 = vmatpush1.msra.mxu0 %v1426_v5  ;;  %1200 = vmatpush1.msra.mxu1 %v1426_v5 }
  0xa0   :  { %v1443_v21 = vadd.f32 %v150_v16, %v121_v15  ;;  %v1445_v22 = vadd.f32 %v151_v18, %v122_v9  ;;  %v275_v24 = vmul.f32 %v271_v19, %v261_v20  ;;  %v276_v31 = vmul.f32 %v271_v19, %v262_v23 }
  0xa2   :  { %205 = vmatprep.subr.mxu0 %v1445_v22  ;;  %1199 = vmatprep.subr.mxu1 %v1445_v22  ;;  %v259_v25 = vmax.f32 %v1443_v21, 0.0  ;;  %v260_v32 = vmax.f32 %v1445_v22, 0.0  ;;  %v317_v46 = vpop.permute.xlu0 %316 }
  0xa3   :  { %206 = vmatpush1.msra.mxu0 %v1443_v21  ;;  %1201 = vmatpush1.msra.mxu1 %v1443_v21 }
  0xa4   :  { %v283_v28 = vpop.permute.xlu1 %282  ;;  %v273_v33 = vmul.f32 %v266_v30, %v259_v25  ;;  %v274_v37 = vmul.f32 %v266_v30, %v260_v32  ;;  %1173 = vmatmul.mubr.msk.f32.vlgmr.msra.gmra.mxu1 %vm170_vm6, %v1470_v41 }
  0xa5   :  { %v1453_v29 = vadd.f32 %v283_v28, %v275_v24  ;;  %v1458_v35 = vadd.f32 %v283_v28, %v276_v31  ;;  %460 = vmatprep.mubr.f32.mxu1 %v1289_v40 }
  0xa7   :  { %301 = vrot.lane.b32.xlu1 %v1453_v29, %s1284_s20  ;;  %v337_v48 = vpop.permute.xlu0 %336 }
  0xa8   :  { %v279_v34 = vpop.permute.xlu1 %278  ;;  %v341_v18 = vmul.f32 %v337_v48, %v1453_v29  ;;  %v342_v19 = vmul.f32 %v337_v48, %v1458_v35 }
  0xa9   :  { %v1460_v36 = vadd.f32 %v279_v34, %v273_v33  ;;  %v1473_v42 = vadd.f32 %v279_v34, %v274_v37 }
  0xab   :  { %305 = vrot.lane.b32.xlu1 %v1458_v35, %s1284_s20  ;;  %299 = vrot.lane.b32.xlu0 %v1460_v36, %s1284_s20 }
  0xac   :  { %v365_v50 = vpop.permute.xlu0 %364 }
  0xad   :  { %v313_v45 = vpop.permute.xlu1 %312 }
  0xaf   :  { %303 = vrot.lane.b32.xlu1 %v1473_v42, %s1284_s20  ;;  %353 = vrot.lane.b32.xlu0 %v1458_v35, %s1287_s25 }
  0xb0   :  { %v361_v52 = vpop.permute.xlu0 %360 }
  0xb2   :  { %v295_v47 = vpop.permute.xlu1 %294 }
  0xb3   :  { %349 = vrot.lane.b32.xlu1 %v1453_v29, %s1287_s25  ;;  %351 = vrot.lane.b32.xlu0 %v1473_v42, %s1287_s25 }
  0xb6   :  { %v291_v49 = vpop.permute.xlu1 %290 }
  0xb7   :  { %347 = vrot.lane.b32.xlu1 %v1460_v36, %s1287_s25  ;;  %490 = vperm.xlu0 %1231, %v1180_v43  }
  0xbb   :  { %495 = vperm.xlu1 %1230, %v1181_v44   ;;  %1233 = vset.pattern.permute.xlu0 %v1281_v1  ;;  %v333_v51 = vpop.permute.xlu1 %332 }
  0xbc   :  { %541 = vperm.xlu0 %1233, %v1181_v44   ;;  %v339_v33 = vmul.f32 %v333_v51, %v1460_v36  ;;  %v340_v34 = vmul.f32 %v333_v51, %v1473_v42 }
  0xbf   :  { %1232 = vset.pattern.permute.xlu1 %v1288_v13 }
  0xc0   :  { %507 = vperm.xlu1 %1232, %v1181_v44   ;;  %1236 = vset.pattern.permute.xlu0 %v1283_v4 }
  0xc1   :  { %561 = vperm.xlu0 %1236, %v1181_v44  }
  0xc4   :  { %503 = vperm.xlu1 %1232, %v1180_v43  }
  0xc5   :  { %1237 = vset.pattern.permute.xlu0 %v1285_v7 }
  0xc6   :  { %589 = vperm.xlu0 %1237, %v1181_v44  }
  0xc8   :  { %1234 = vset.pattern.permute.xlu1 %v1281_v1 }
  0xc9   :  { %537 = vperm.xlu1 %1234, %v1180_v43  }
  0xca   :  { %585 = vperm.xlu0 %1237, %v1180_v43  }
  0xcd   :  { %1235 = vset.pattern.permute.xlu1 %v1282_v2 }
  0xce   :  { %519 = vperm.xlu1 %1235, %v1181_v44   ;;  %1240 = vset.pattern.permute.xlu0 %v1286_v10 }
  0xd2   :  { %515 = vperm.xlu1 %1235, %v1180_v43  }
  0xd6   :  { %1238 = vset.pattern.permute.xlu1 %v1283_v4 }
  0xd7   :  { %557 = vperm.xlu1 %1238, %v1180_v43  }
  0xdb   :  { %1239 = vset.pattern.permute.xlu1 %v1286_v10 }
 0x119   :  { %v302_v53 = vpop.permute.xlu1 %301 }
 0x11d   :  { %v306_v54 = vpop.permute.xlu1 %305  ;;  %v300_v55 = vpop.permute.xlu0 %299 }
 0x11e   :  { %v308_v56 = vsel %vm84_vm0, %v302_v53, %v306_v54  ;;  %v310_v57 = vsel %vm84_vm0, %v306_v54, %v302_v53 }
 0x11f   :  { %v321_v58 = vmul.f32 %v317_v46, %v310_v57  ;;  %v322_v59 = vmul.f32 %v317_v46, %v308_v56 }
 0x121   :  { %v325_v60 = vsel %vm48_vm1, %v321_v58, 0.0  ;;  %v326_v61 = vsel %vm49_vm2, %v322_v59, 0.0  ;;  %v304_v62 = vpop.permute.xlu1 %303  ;;  %v354_v12 = vpop.permute.xlu0 %353 }
 0x122   :  { %v307_v63 = vsel %vm84_vm0, %v300_v55, %v304_v62  ;;  %v309_v0 = vsel %vm84_vm0, %v304_v62, %v300_v55  ;;  %v329_v8 = vadd.f32 %v325_v60, %v295_v47  ;;  %v330_v14 = vadd.f32 %v326_v61, %v295_v47 }
 0x123   :  { %v319_v3 = vmul.f32 %v313_v45, %v309_v0  ;;  %v320_v11 = vmul.f32 %v313_v45, %v307_v63 }
 0x124   :  { %v345_v31 = vadd.f32 %v341_v18, %v329_v8  ;;  %v346_v32 = vadd.f32 %v342_v19, %v330_v14  ;;  %v1570_v14 = vld [vmem:[%s1833_s2] sm:$0xff] }
 0x125   :  { %v323_v9 = vsel %vm48_vm1, %v319_v3, 0.0  ;;  %v324_v15 = vsel %vm49_vm2, %v320_v11, 0.0  ;;  %v350_v16 = vpop.permute.xlu1 %349  ;;  %v352_v37 = vpop.permute.xlu0 %351  ;;  %1172 = vmatmul.mubr.msk.f32.vlgmr.msra.gmra.mxu0 %vm170_vm6, %v1570_v14 }
 0x126   :  { %v356_v20 = vsel %vm133_vm3, %v350_v16, %v354_v12  ;;  %v358_v23 = vsel %vm133_vm3, %v354_v12, %v350_v16  ;;  %v327_v28 = vadd.f32 %v323_v9, %v291_v49  ;;  %v328_v30 = vadd.f32 %v324_v15, %v291_v49  ;;  %685 = vmatprep.mubr.f32.mxu0 %v1289_v40  ;;  %v1186_v15 = vld [vmem:[%s1832_s1 + $0x30] sm:$0xff]  ;;  %v1187_v16 = vld [vmem:[%s1832_s1 + $0x38] sm:$0xff] }
 0x127   :  { %v369_v24 = vmul.f32 %v365_v50, %v356_v20  ;;  %v370_v25 = vmul.f32 %v365_v50, %v358_v23 }
 0x128   :  { %v343_v49 = vadd.f32 %v339_v33, %v327_v28  ;;  %v344_v42 = vadd.f32 %v340_v34, %v328_v30 }
 0x129   :  { %v373_v29 = vsel %vm58_vm4, %v369_v24, 0.0  ;;  %v374_v35 = vsel %vm59_vm5, %v370_v25, 0.0  ;;  %v348_v43 = vpop.permute.xlu1 %347 }
 0x12a   :  { %v377_v44 = vadd.f32 %v373_v29, %v345_v31  ;;  %v355_v45 = vsel %vm133_vm3, %v348_v43, %v352_v37  ;;  %v357_v46 = vsel %vm133_vm3, %v352_v37, %v348_v43  ;;  %v378_v47 = vadd.f32 %v374_v35, %v346_v32 }
 0x12b   :  { %v367_v48 = vmul.f32 %v361_v52, %v355_v45  ;;  %v368_v36 = vmul.f32 %v361_v52, %v357_v46 }
 0x12c   :  { %424 = vmatprep.subr.mxu1 %v378_v47  ;;  %v1540_v55 = vadd.f32 %v377_v44, %v1426_v5  ;;  %v1546_v57 = vadd.f32 %v378_v47, %v1428_v6 }
 0x12d   :  { %v371_v50 = vsel %vm58_vm4, %v367_v48, 0.0  ;;  %v372_v51 = vsel %vm59_vm5, %v368_v36, 0.0  ;;  %425 = vmatpush1.msra.mxu1 %v377_v44 }
 0x12e   :  { %v375_v53 = vadd.f32 %v371_v50, %v343_v49  ;;  %v376_v54 = vadd.f32 %v372_v51, %v344_v42  ;;  %v486_v58 = vmax.f32 %v1540_v55, 0.0  ;;  %v487_v5 = vmax.f32 %v1546_v57, 0.0 }
 0x130   :  { %426 = vmatprep.subr.mxu1 %v376_v54  ;;  %v1543_v56 = vadd.f32 %v375_v53, %v1443_v21  ;;  %v1550_v59 = vadd.f32 %v376_v54, %v1445_v22 }
 0x131   :  { %427 = vmatpush1.msra.mxu1 %v375_v53 }
 0x132   :  { %v484_v60 = vmax.f32 %v1543_v56, 0.0  ;;  %v491_v62 = vpop.permute.xlu0 %490  ;;  %v485_v21 = vmax.f32 %v1550_v59, 0.0 }
 0x134   :  { %v498_v3 = vmul.f32 %v491_v62, %v484_v60  ;;  %v499_v8 = vmul.f32 %v491_v62, %v485_v21 }
 0x136   :  { %v496_v52 = vpop.permute.xlu1 %495 }
 0x137   :  { %v500_v61 = vmul.f32 %v496_v52, %v486_v58  ;;  %v501_v11 = vmul.f32 %v496_v52, %v487_v5  ;;  %v542_v19 = vpop.permute.xlu0 %541 }
 0x13b   :  { %v508_v63 = vpop.permute.xlu1 %507 }
 0x13c   :  { %v1554_v0 = vadd.f32 %v508_v63, %v500_v61  ;;  %v1559_v12 = vadd.f32 %v508_v63, %v501_v11  ;;  %v562_v23 = vpop.permute.xlu0 %561 }
 0x13e   :  { %526 = vrot.lane.b32.xlu1 %v1554_v0, %s1284_s20  ;;  %v566_v54 = vmul.f32 %v562_v23, %v1554_v0  ;;  %v567_v52 = vmul.f32 %v562_v23, %v1559_v12 }
 0x13f   :  { %v504_v6 = vpop.permute.xlu1 %503 }
 0x140   :  { %v1561_v22 = vadd.f32 %v504_v6, %v498_v3  ;;  %v1572_v9 = vadd.f32 %v504_v6, %v499_v8 }
 0x141   :  { %v590_v25 = vpop.permute.xlu0 %589 }
 0x142   :  { %530 = vrot.lane.b32.xlu1 %v1559_v12, %s1284_s20  ;;  %524 = vrot.lane.b32.xlu0 %v1561_v22, %s1284_s20 }
 0x144   :  { %v538_v18 = vpop.permute.xlu1 %537 }
 0x145   :  { %v586_v30 = vpop.permute.xlu0 %585 }
 0x146   :  { %528 = vrot.lane.b32.xlu1 %v1572_v9, %s1284_s20  ;;  %578 = vrot.lane.b32.xlu0 %v1559_v12, %s1287_s25 }
 0x149   :  { %v520_v20 = vpop.permute.xlu1 %519 }
 0x14a   :  { %574 = vrot.lane.b32.xlu1 %v1554_v0, %s1287_s25  ;;  %576 = vrot.lane.b32.xlu0 %v1572_v9, %s1287_s25 }
 0x14d   :  { %v516_v24 = vpop.permute.xlu1 %515 }
 0x14e   :  { %572 = vrot.lane.b32.xlu1 %v1561_v22, %s1287_s25  ;;  %715 = vperm.xlu0 %1240, %v1186_v15  }
 0x152   :  { %720 = vperm.xlu1 %1239, %v1187_v16   ;;  %1242 = vset.pattern.permute.xlu0 %v1281_v1  ;;  %v558_v28 = vpop.permute.xlu1 %557 }
 0x153   :  { %766 = vperm.xlu0 %1242, %v1187_v16   ;;  %v564_v11 = vmul.f32 %v558_v28, %v1561_v22  ;;  %v565_v6 = vmul.f32 %v558_v28, %v1572_v9 }
 0x156   :  { %1241 = vset.pattern.permute.xlu1 %v1288_v13 }
 0x157   :  { %732 = vperm.xlu1 %1241, %v1187_v16   ;;  %1245 = vset.pattern.permute.xlu0 %v1283_v4 }
 0x158   :  { %786 = vperm.xlu0 %1245, %v1187_v16  }
 0x15b   :  { %728 = vperm.xlu1 %1241, %v1186_v15  }
 0x15c   :  { %1246 = vset.pattern.permute.xlu0 %v1285_v7 }
 0x15d   :  { %814 = vperm.xlu0 %1246, %v1187_v16  }
 0x15f   :  { %1243 = vset.pattern.permute.xlu1 %v1281_v1 }
 0x160   :  { %762 = vperm.xlu1 %1243, %v1186_v15  }
 0x161   :  { %810 = vperm.xlu0 %1246, %v1186_v15  }
 0x164   :  { %1244 = vset.pattern.permute.xlu1 %v1282_v2  ;;  %v247_v17 = vpop.f32.mrf.mxu1 }
 0x165   :  { %744 = vperm.xlu1 %1244, %v1187_v16   ;;  %1249 = vset.pattern.permute.xlu0 %v1286_v10 }
 0x169   :  { %740 = vperm.xlu1 %1244, %v1186_v15  }
 0x16d   :  { %1247 = vset.pattern.permute.xlu1 %v1283_v4 }
 0x16e   :  { %782 = vperm.xlu1 %1247, %v1186_v15  }
 0x172   :  { %1248 = vset.pattern.permute.xlu1 %v1286_v10 }
 0x1b0   :  { %v527_v31 = vpop.permute.xlu1 %526 }
 0x1b4   :  { %v531_v32 = vpop.permute.xlu1 %530  ;;  %v525_v33 = vpop.permute.xlu0 %524 }
 0x1b5   :  { %v533_v34 = vsel %vm84_vm0, %v527_v31, %v531_v32  ;;  %v535_v29 = vsel %vm84_vm0, %v531_v32, %v527_v31 }
 0x1b6   :  { %v546_v35 = vmul.f32 %v542_v19, %v535_v29  ;;  %v547_v37 = vmul.f32 %v542_v19, %v533_v34 }
 0x1b8   :  { %v550_v10 = vsel %vm48_vm1, %v546_v35, 0.0  ;;  %v551_v43 = vsel %vm49_vm2, %v547_v37, 0.0  ;;  %v529_v44 = vpop.permute.xlu1 %528  ;;  %v579_v36 = vpop.permute.xlu0 %578 }
 0x1b9   :  { %v532_v45 = vsel %vm84_vm0, %v525_v33, %v529_v44  ;;  %v534_v46 = vsel %vm84_vm0, %v529_v44, %v525_v33  ;;  %v554_v49 = vadd.f32 %v550_v10, %v520_v20  ;;  %v555_v42 = vadd.f32 %v551_v43, %v520_v20 }
 0x1ba   :  { %v544_v47 = vmul.f32 %v538_v18, %v534_v46  ;;  %v545_v48 = vmul.f32 %v538_v18, %v532_v45 }
 0x1bb   :  { %v570_v21 = vadd.f32 %v566_v54, %v554_v49  ;;  %v571_v3 = vadd.f32 %v567_v52, %v555_v42  ;;  %v1669_v42 = vld [vmem:[%s1833_s2 + $0x10] sm:$0xff] }
 0x1bc   :  { %v548_v50 = vsel %vm48_vm1, %v544_v47, 0.0  ;;  %v549_v51 = vsel %vm49_vm2, %v545_v48, 0.0  ;;  %v575_v53 = vpop.permute.xlu1 %574  ;;  %v577_v8 = vpop.permute.xlu0 %576  ;;  %1178 = vmatmul.mubr.msk.f32.vlgmr.msra.gmra.mxu1 %vm170_vm6, %v1669_v42 }
 0x1bd   :  { %v581_v58 = vsel %vm133_vm3, %v575_v53, %v579_v36  ;;  %v583_v60 = vsel %vm133_vm3, %v579_v36, %v575_v53  ;;  %v552_v63 = vadd.f32 %v548_v50, %v516_v24  ;;  %v553_v5 = vadd.f32 %v549_v51, %v516_v24  ;;  %466 = vmatprep.mubr.f32.mxu1 %v1289_v40  ;;  %v1192_v51 = vld [vmem:[%s1832_s1 + $0x40] sm:$0xff]  ;;  %v1193_v53 = vld [vmem:[%s1832_s1 + $0x48] sm:$0xff] }
 0x1be   :  { %v594_v61 = vmul.f32 %v590_v25, %v581_v58  ;;  %v595_v62 = vmul.f32 %v590_v25, %v583_v60 }
 0x1bf   :  { %v568_v24 = vadd.f32 %v564_v11, %v552_v63  ;;  %v569_v9 = vadd.f32 %v565_v6, %v553_v5 }
 0x1c0   :  { %v598_v0 = vsel %vm58_vm4, %v594_v61, 0.0  ;;  %v599_v12 = vsel %vm59_vm5, %v595_v62, 0.0  ;;  %v573_v15 = vpop.permute.xlu1 %572 }
 0x1c1   :  { %v602_v16 = vadd.f32 %v598_v0, %v570_v21  ;;  %v580_v18 = vsel %vm133_vm3, %v573_v15, %v577_v8  ;;  %v582_v19 = vsel %vm133_vm3, %v577_v8, %v573_v15  ;;  %v603_v20 = vadd.f32 %v599_v12, %v571_v3 }
 0x1c2   :  { %v592_v23 = vmul.f32 %v586_v30, %v580_v18  ;;  %v593_v22 = vmul.f32 %v586_v30, %v582_v19 }
 0x1c3   :  { %649 = vmatprep.subr.mxu0 %v603_v20  ;;  %v1639_v33 = vadd.f32 %v602_v16, %v1540_v55  ;;  %v1645_v29 = vadd.f32 %v603_v20, %v1546_v57 }
 0x1c4   :  { %v596_v25 = vsel %vm58_vm4, %v592_v23, 0.0  ;;  %v597_v28 = vsel %vm59_vm5, %v593_v22, 0.0  ;;  %650 = vmatpush1.msra.mxu0 %v602_v16 }
 0x1c5   :  { %v600_v31 = vadd.f32 %v596_v25, %v568_v24  ;;  %v601_v32 = vadd.f32 %v597_v28, %v569_v9  ;;  %v711_v35 = vmax.f32 %v1639_v33, 0.0  ;;  %v712_v55 = vmax.f32 %v1645_v29, 0.0 }
 0x1c7   :  { %651 = vmatprep.subr.mxu0 %v601_v32  ;;  %v1642_v34 = vadd.f32 %v600_v31, %v1543_v56  ;;  %v1649_v37 = vadd.f32 %v601_v32, %v1550_v59 }
 0x1c8   :  { %652 = vmatpush1.msra.mxu0 %v600_v31 }
 0x1c9   :  { %v709_v10 = vmax.f32 %v1642_v34, 0.0  ;;  %v716_v44 = vpop.permute.xlu0 %715  ;;  %v710_v56 = vmax.f32 %v1649_v37, 0.0 }
 0x1cb   :  { %v723_v47 = vmul.f32 %v716_v44, %v709_v10  ;;  %v724_v49 = vmul.f32 %v716_v44, %v710_v56 }
 0x1cd   :  { %v721_v30 = vpop.permute.xlu1 %720 }
 0x1ce   :  { %v725_v43 = vmul.f32 %v721_v30, %v711_v35  ;;  %v726_v48 = vmul.f32 %v721_v30, %v712_v55  ;;  %v767_v54 = vpop.permute.xlu0 %766 }
 0x1d2   :  { %v733_v45 = vpop.permute.xlu1 %732 }
 0x1d3   :  { %v1653_v46 = vadd.f32 %v733_v45, %v725_v43  ;;  %v1658_v36 = vadd.f32 %v733_v45, %v726_v48  ;;  %v787_v58 = vpop.permute.xlu0 %786 }
 0x1d5   :  { %751 = vrot.lane.b32.xlu1 %v1653_v46, %s1284_s20  ;;  %v791_v9 = vmul.f32 %v787_v58, %v1653_v46  ;;  %v792_v25 = vmul.f32 %v787_v58, %v1658_v36 }
 0x1d6   :  { %v729_v57 = vpop.permute.xlu1 %728 }
 0x1d7   :  { %v1660_v59 = vadd.f32 %v729_v57, %v723_v47  ;;  %v1671_v50 = vadd.f32 %v729_v57, %v724_v49 }
 0x1d8   :  { %v815_v61 = vpop.permute.xlu0 %814 }
 0x1d9   :  { %755 = vrot.lane.b32.xlu1 %v1658_v36, %s1284_s20  ;;  %749 = vrot.lane.b32.xlu0 %v1660_v59, %s1284_s20 }
 0x1dd   :  { %753 = vrot.lane.b32.xlu1 %v1671_v50, %s1284_s20  ;;  %803 = vrot.lane.b32.xlu0 %v1658_v36, %s1287_s25 }
 0x1e1   :  { %799 = vrot.lane.b32.xlu1 %v1653_v46, %s1287_s25  ;;  %801 = vrot.lane.b32.xlu0 %v1671_v50, %s1287_s25 }
 0x1e5   :  { %797 = vrot.lane.b32.xlu1 %v1660_v59, %s1287_s25  ;;  %940 = vperm.xlu0 %1249, %v1192_v51  }
 0x1e9   :  { %945 = vperm.xlu1 %1248, %v1193_v53   ;;  %1251 = vset.pattern.permute.xlu0 %v1281_v1 }
 0x1ea   :  { %991 = vperm.xlu0 %1251, %v1193_v53  }
 0x1ed   :  { %1250 = vset.pattern.permute.xlu1 %v1288_v13  ;;  %v763_v13 = vpop.permute.xlu1 %762 }
 0x1ee   :  { %957 = vperm.xlu1 %1250, %v1193_v53   ;;  %1254 = vset.pattern.permute.xlu0 %v1283_v4 }
 0x1ef   :  { %1011 = vperm.xlu0 %1254, %v1193_v53  }
 0x1f1   :  { %v745_v52 = vpop.permute.xlu1 %744 }
 0x1f2   :  { %953 = vperm.xlu1 %1250, %v1192_v51  }
 0x1f3   :  { %1255 = vset.pattern.permute.xlu0 %v1285_v7  ;;  %v811_v7 = vpop.permute.xlu0 %810 }
 0x1f4   :  { %1039 = vperm.xlu0 %1255, %v1193_v53  }
 0x1f5   :  { %v741_v60 = vpop.permute.xlu1 %740 }
 0x1f6   :  { %1252 = vset.pattern.permute.xlu1 %v1281_v1 }
 0x1f7   :  { %987 = vperm.xlu1 %1252, %v1192_v51  }
 0x1f8   :  { %1035 = vperm.xlu0 %1255, %v1192_v51  }
 0x1f9   :  { %v783_v62 = vpop.permute.xlu1 %782 }
 0x1fa   :  { %v789_v45 = vmul.f32 %v783_v62, %v1660_v59  ;;  %v790_v55 = vmul.f32 %v783_v62, %v1671_v50  ;;  %v1182_v62 = vld [vmem:[%s1833_s2 + $0x20] sm:$0xff] }
 0x1fb   :  { %1253 = vset.pattern.permute.xlu1 %v1282_v2  ;;  %1184 = vmatmul.mubr.msk.f32.vlgmr.msra.gmra.mxu0 %vm170_vm6, %v1182_v62 }
 0x1fc   :  { %969 = vperm.xlu1 %1253, %v1193_v53   ;;  %691 = vmatprep.mubr.f32.mxu0 %v1289_v40 }
 0x200   :  { %965 = vperm.xlu1 %1253, %v1192_v51  }
 0x204   :  { %1256 = vset.pattern.permute.xlu1 %v1283_v4 }
 0x205   :  { %1007 = vperm.xlu1 %1256, %v1192_v51  }
 0x247   :  { %v752_v63 = vpop.permute.xlu1 %751 }
 0x24b   :  { %v756_v5 = vpop.permute.xlu1 %755  ;;  %v750_v1 = vpop.permute.xlu0 %749 }
 0x24c   :  { %v758_v21 = vsel %vm84_vm0, %v752_v63, %v756_v5  ;;  %v760_v2 = vsel %vm84_vm0, %v756_v5, %v752_v63  ;;  %v1188_v63 = vld [vmem:[%s1833_s2 + $0x30] sm:$0xff] }
 0x24d   :  { %v771_v3 = vmul.f32 %v767_v54, %v760_v2  ;;  %v772_v4 = vmul.f32 %v767_v54, %v758_v21  ;;  %v1183_v21 = vld [vmem:[%s1833_s2 + $0x28] sm:$0xff] }
 0x24e   :  { %1185 = vmatmul.mubr.msk.f32.gmra.mxu0 %vm170_vm6, %v1183_v21 }
 0x24f   :  { %v775_v11 = vsel %vm48_vm1, %v771_v3, 0.0  ;;  %v776_v6 = vsel %vm49_vm2, %v772_v4, 0.0  ;;  %v754_v0 = vpop.permute.xlu1 %753  ;;  %v804_v18 = vpop.permute.xlu0 %803  ;;  %v1189_v3 = vld [vmem:[%s1833_s2 + $0x38] sm:$0xff]  ;;  %1135 = vmatprep.mubr.f32.mxu0 %v1289_v40 }
 0x250   :  { %v757_v12 = vsel %vm84_vm0, %v750_v1, %v754_v0  ;;  %v759_v8 = vsel %vm84_vm0, %v754_v0, %v750_v1  ;;  %v779_v19 = vadd.f32 %v775_v11, %v745_v52  ;;  %v780_v20 = vadd.f32 %v776_v6, %v745_v52 }
 0x251   :  { %v769_v15 = vmul.f32 %v763_v13, %v759_v8  ;;  %v770_v16 = vmul.f32 %v763_v13, %v757_v12 }
 0x252   :  { %v795_v43 = vadd.f32 %v791_v9, %v779_v19  ;;  %v796_v44 = vadd.f32 %v792_v25, %v780_v20 }
 0x253   :  { %v773_v23 = vsel %vm48_vm1, %v769_v15, 0.0  ;;  %v774_v22 = vsel %vm49_vm2, %v770_v16, 0.0  ;;  %v800_v24 = vpop.permute.xlu1 %799  ;;  %v802_v47 = vpop.permute.xlu0 %801 }
 0x254   :  { %v806_v28 = vsel %vm133_vm3, %v800_v24, %v804_v18  ;;  %v808_v31 = vsel %vm133_vm3, %v804_v18, %v800_v24  ;;  %v777_v35 = vadd.f32 %v773_v23, %v741_v60  ;;  %v778_v10 = vadd.f32 %v774_v22, %v741_v60  ;;  %v1781_v24 = vld [vmem:[%s1833_s2 + $0x40] sm:$0xff] }
 0x255   :  { %v819_v32 = vmul.f32 %v815_v61, %v806_v28  ;;  %v820_v30 = vmul.f32 %v815_v61, %v808_v31  ;;  %v1177_v61 = vld [vmem:[%s1833_s2 + $0x18] sm:$0xff]  ;;  %v1290_v22 = vmov 16  }
 0x256   :  { %v793_v13 = vadd.f32 %v789_v45, %v777_v35  ;;  %v794_v50 = vadd.f32 %v790_v55, %v778_v10  ;;  %1179 = vmatmul.mubr.msk.f32.gmra.mxu1 %vm170_vm6, %v1177_v61  ;;  %1258 = vset.pattern.permute.xlu0 %v1290_v22 }
 0x257   :  { %v823_v46 = vsel %vm58_vm4, %v819_v32, 0.0  ;;  %v824_v56 = vsel %vm59_vm5, %v820_v30, 0.0  ;;  %v798_v48 = vpop.permute.xlu1 %797  ;;  %910 = vmatprep.mubr.f32.mxu1 %v1289_v40  ;;  %1257 = vset.pattern.permute.xlu1 %v1290_v22 }
 0x258   :  { %v827_v57 = vadd.f32 %v823_v46, %v795_v43  ;;  %v805_v36 = vsel %vm133_vm3, %v798_v48, %v802_v47  ;;  %v807_v49 = vsel %vm133_vm3, %v802_v47, %v798_v48  ;;  %v828_v51 = vadd.f32 %v824_v56, %v796_v44 }
 0x259   :  { %v817_v53 = vmul.f32 %v811_v7, %v805_v36  ;;  %v818_v59 = vmul.f32 %v811_v7, %v807_v49 }
 0x25a   :  { %874 = vmatprep.subr.mxu1 %v828_v51  ;;  %v929_v7 = vadd.f32 %v827_v57, %v1639_v33  ;;  %v930_v33 = vadd.f32 %v828_v51, %v1645_v29 }
 0x25b   :  { %v821_v54 = vsel %vm58_vm4, %v817_v53, 0.0  ;;  %v822_v52 = vsel %vm59_vm5, %v818_v59, 0.0  ;;  %875 = vmatpush1.msra.mxu1 %v827_v57 }
 0x25c   :  { %v825_v58 = vadd.f32 %v821_v54, %v793_v13  ;;  %v826_v60 = vadd.f32 %v822_v52, %v794_v50  ;;  %v936_v2 = vmax.f32 %v929_v7, 0.0  ;;  %v937_v12 = vmax.f32 %v930_v33, 0.0 }
 0x25e   :  { %876 = vmatprep.subr.mxu1 %v826_v60  ;;  %v927_v5 = vadd.f32 %v825_v58, %v1642_v34  ;;  %v928_v34 = vadd.f32 %v826_v60, %v1649_v37 }
 0x25f   :  { %877 = vmatpush1.msra.mxu1 %v825_v58 }
 0x260   :  { %1190 = vmatmul.mubr.msk.f32.vlgmr.msra.gmra.mxu1 %vm170_vm6, %v1188_v63  ;;  %v934_v4 = vmax.f32 %v927_v5, 0.0  ;;  %v941_v6 = vpop.permute.xlu0 %940  ;;  %v935_v15 = vmax.f32 %v928_v34, 0.0 }
 0x261   :  { %916 = vmatprep.mubr.f32.mxu1 %v1289_v40 }
 0x262   :  { %v948_v16 = vmul.f32 %v941_v6, %v934_v4  ;;  %v949_v23 = vmul.f32 %v941_v6, %v935_v15 }
 0x264   :  { %v946_v1 = vpop.permute.xlu1 %945  ;;  %1191 = vmatmul.mubr.msk.f32.gmra.mxu1 %vm170_vm6, %v1189_v3 }
 0x265   :  { %v950_v11 = vmul.f32 %v946_v1, %v936_v2  ;;  %v951_v29 = vmul.f32 %v946_v1, %v937_v12 }
 0x269   :  { %v958_v0 = vpop.permute.xlu1 %957 }
 0x26a   :  { %v962_v8 = vadd.f32 %v958_v0, %v950_v11  ;;  %v963_v19 = vadd.f32 %v958_v0, %v951_v29 }
 0x26c   :  { %976 = vrot.lane.b32.xlu1 %v962_v8, %s1284_s20 }
 0x26d   :  { %v954_v18 = vpop.permute.xlu1 %953 }
 0x26e   :  { %v1764_v20 = vadd.f32 %v954_v18, %v948_v16  ;;  %v961_v37 = vadd.f32 %v954_v18, %v949_v23 }
 0x270   :  { %980 = vrot.lane.b32.xlu1 %v963_v19, %s1284_s20  ;;  %974 = vrot.lane.b32.xlu0 %v1764_v20, %s1284_s20 }
 0x274   :  { %978 = vrot.lane.b32.xlu1 %v961_v37, %s1284_s20  ;;  %1028 = vrot.lane.b32.xlu0 %v963_v19, %s1287_s25 }
 0x278   :  { %1024 = vrot.lane.b32.xlu1 %v962_v8, %s1287_s25  ;;  %1026 = vrot.lane.b32.xlu0 %v961_v37, %s1287_s25 }
 0x27c   :  { %1022 = vrot.lane.b32.xlu1 %v1764_v20, %s1287_s25  ;;  %167 = vperm.xlu0 %1258, %v1470_v41   ;;  %v1787_v41 = vld [vmem:[%s1833_s2 + $0x48] sm:$0xff]  ;;  %s1291_s2 = smov [#allocation2]  }
 0x27d   :  { %s1161_s5 = sshll.u32 %s1291_s2, 4  ;;  %s1162_s5 = int_to_ptr.vmem [resolvable:$true] %s1161_s5 }
 0x27e   :  { %s1259_s6 = scalar_lea.vmem %s1162_s5, 512  ;;  %p1264_p1 = scmp.lt.s32.totalorder %s1162_s5, %s1162_s5 }
 0x27f   :  { %p1260_p0 = scmp.ne.s32.totalorder %s1162_s5, %s1259_s6  ;;  %p1265_p2 = scmp.lt.s32.totalorder %s1259_s6, %s1259_s6 }
 0x280   :  { %162 = vperm.xlu1 %1257, %v1570_v14   ;;  %609 = vperm.xlu0 %1258, %v1182_v62   ;;  %v988_v14 = vpop.permute.xlu1 %987 }
 0x281   :  { %p1266_p3 = por %p1265_p2, %p1264_p1 }
 0x283   :  { %p1267_p4 = pnand %p1266_p3, %p1260_p0 }
 0x284   :  { %384 = vperm.xlu1 %1257, %v1669_v42   ;;  %834 = vperm.xlu0 %1258, %v1188_v63   ;;  %v992_v42 = vpop.permute.xlu0 %991  ;;  %v970_v9 = vpop.permute.xlu1 %969 }
 0x288   :  { %389 = vperm.xlu1 %1257, %v1177_v61   ;;  %1059 = vperm.xlu0 %1258, %v1781_v24   ;;  %v1012_v25 = vpop.permute.xlu0 %1011  ;;  %v966_v28 = vpop.permute.xlu1 %965 }
 0x289   :  { %v1016_v58 = vmul.f32 %v1012_v25, %v962_v8  ;;  %v1017_v60 = vmul.f32 %v1012_v25, %v963_v19 }
 0x28c   :  { %614 = vperm.xlu1 %1257, %v1183_v21   ;;  %v1040_v31 = vpop.permute.xlu0 %1039  ;;  %v1008_v32 = vpop.permute.xlu1 %1007 }
 0x28d   :  { %v1014_v26 = vmul.f32 %v1008_v32, %v1764_v20  ;;  %v1015_v2 = vmul.f32 %v1008_v32, %v961_v37  ;;  %v249_v37 = vpop.f32.mrf.mxu1 }
 0x28f   :  { %v462_v38 = vpop.f32.mrf.mxu1 }
 0x290   :  { %839 = vperm.xlu1 %1257, %v1189_v3   ;;  %v1036_v30 = vpop.permute.xlu0 %1035 }
 0x291   :  { %v464_v39 = vpop.f32.mrf.mxu1 }
 0x294   :  { %1064 = vperm.xlu1 %1257, %v1787_v41  }
 0x2de   :  { %v977_v35 = vpop.permute.xlu1 %976 }
 0x2e2   :  { %v981_v10 = vpop.permute.xlu1 %980  ;;  %v975_v43 = vpop.permute.xlu0 %974 }
 0x2e3   :  { %v983_v44 = vsel %vm84_vm0, %v977_v35, %v981_v10  ;;  %v985_v45 = vsel %vm84_vm0, %v981_v10, %v977_v35 }
 0x2e4   :  { %v996_v55 = vmul.f32 %v992_v42, %v985_v45  ;;  %v997_v46 = vmul.f32 %v992_v42, %v983_v44 }
 0x2e6   :  { %v1000_v56 = vsel %vm48_vm1, %v996_v55, 0.0  ;;  %v1001_v47 = vsel %vm49_vm2, %v997_v46, 0.0  ;;  %v979_v48 = vpop.permute.xlu1 %978  ;;  %v1029_v53 = vpop.permute.xlu0 %1028 }
 0x2e7   :  { %v982_v57 = vsel %vm84_vm0, %v975_v43, %v979_v48  ;;  %v984_v36 = vsel %vm84_vm0, %v979_v48, %v975_v43  ;;  %v1004_v59 = vadd.f32 %v1000_v56, %v970_v9  ;;  %v1005_v13 = vadd.f32 %v1001_v47, %v970_v9 }
 0x2e8   :  { %v994_v49 = vmul.f32 %v988_v14, %v984_v36  ;;  %v995_v51 = vmul.f32 %v988_v14, %v982_v57  ;;  %v241_v14 = vpop.f32.mrf.mxu0 }
 0x2e9   :  { %v1020_v21 = vadd.f32 %v1016_v58, %v1004_v59  ;;  %v1021_v33 = vadd.f32 %v1017_v60, %v1005_v13 }
 0x2ea   :  { %v998_v50 = vsel %vm48_vm1, %v994_v49, 0.0  ;;  %v999_v54 = vsel %vm49_vm2, %v995_v51, 0.0  ;;  %v1025_v52 = vpop.permute.xlu1 %1024  ;;  %v1027_v34 = vpop.permute.xlu0 %1026 }
 0x2eb   :  { %v1031_v61 = vsel %vm133_vm3, %v1025_v52, %v1029_v53  ;;  %v1033_v62 = vsel %vm133_vm3, %v1029_v53, %v1025_v52  ;;  %v1002_v5 = vadd.f32 %v998_v50, %v966_v28  ;;  %v1003_v1 = vadd.f32 %v999_v54, %v966_v28  ;;  %v243_v9 = vpop.f32.mrf.mxu0 }
 0x2ec   :  { %v1044_v7 = vmul.f32 %v1040_v31, %v1031_v61  ;;  %v1045_v63 = vmul.f32 %v1040_v31, %v1033_v62 }
 0x2ed   :  { %v1018_v16 = vadd.f32 %v1014_v26, %v1002_v5  ;;  %v1019_v29 = vadd.f32 %v1015_v2, %v1003_v1  ;;  %v687_v32 = vpop.f32.mrf.mxu0 }
 0x2ee   :  { %v1048_v27 = vsel %vm58_vm4, %v1044_v7, 0.0  ;;  %v1049_v3 = vsel %vm59_vm5, %v1045_v63, 0.0  ;;  %v1023_v4 = vpop.permute.xlu1 %1022 }
 0x2ef   :  { %v1052_v11 = vadd.f32 %v1048_v27, %v1020_v21  ;;  %v1030_v6 = vsel %vm133_vm3, %v1023_v4, %v1027_v34  ;;  %v1032_v0 = vsel %vm133_vm3, %v1027_v34, %v1023_v4  ;;  %v1053_v12 = vadd.f32 %v1049_v3, %v1021_v33 }
 0x2f0   :  { %v1042_v8 = vmul.f32 %v1036_v30, %v1030_v6  ;;  %v1043_v15 = vmul.f32 %v1036_v30, %v1032_v0 }
 0x2f1   :  { %1099 = vmatprep.subr.mxu0 %v1053_v12 }
 0x2f2   :  { %v1046_v18 = vsel %vm58_vm4, %v1042_v8, 0.0  ;;  %v1047_v19 = vsel %vm59_vm5, %v1043_v15, 0.0  ;;  %1100 = vmatpush1.msra.mxu0 %v1052_v11 }
 0x2f3   :  { %v1050_v20 = vadd.f32 %v1046_v18, %v1018_v16  ;;  %v1051_v23 = vadd.f32 %v1047_v19, %v1019_v29 }
 0x2f5   :  { %1101 = vmatprep.subr.mxu0 %v1051_v23 }
 0x2f6   :  { %1102 = vmatpush1.msra.mxu0 %v1050_v20 }
 0x2f7   :  { %1196 = vmatmul.mubr.msk.f32.vlgmr.msra.gmra.mxu0 %vm170_vm6, %v1781_v24  ;;  %v168_v28 = vpop.permute.xlu0 %167  ;;  %v689_v24 = vpop.f32.mrf.mxu0 }
 0x2f8   :  { %1141 = vmatprep.mubr.f32.mxu0 %v1289_v40  ;;  %v248_v48 = vadd.f32 %v247_v17, %v168_v28  ;;  %v250_v59 = vadd.f32 %v249_v37, %v168_v28 }
 0x2fb   :  { %1197 = vmatmul.mubr.msk.f32.gmra.mxu0 %vm170_vm6, %v1787_v41  ;;  %v163_v22 = vpop.permute.xlu1 %162  ;;  %v610_v35 = vpop.permute.xlu0 %609 }
 0x2fc   :  { %v242_v43 = vadd.f32 %v241_v14, %v163_v22  ;;  %v244_v41 = vadd.f32 %v243_v9, %v163_v22  ;;  %v688_v57 = vadd.f32 %v687_v32, %v610_v35  ;;  %v690_v51 = vadd.f32 %v689_v24, %v610_v35 }
 0x2ff   :  { %v385_v42 = vpop.permute.xlu1 %384  ;;  %v835_v36 = vpop.permute.xlu0 %834 }
 0x300   :  { %v463_v40 = vadd.f32 %v462_v38, %v385_v42  ;;  %v465_v44 = vadd.f32 %v464_v39, %v385_v42 }
 0x302   :  { %v473_v56 = vadd.f32 %v463_v40, %v242_v43  ;;  %v474_v49 = vadd.f32 %v465_v44, %v244_v41 }
 0x303   :  { %v390_v30 = vpop.permute.xlu1 %389  ;;  %v1060_v1 = vpop.permute.xlu0 %1059 }
 0x304   :  { %v698_v58 = vadd.f32 %v688_v57, %v473_v56  ;;  %v699_v62 = vadd.f32 %v690_v51, %v474_v49 }
 0x307   :  { %v615_v45 = vpop.permute.xlu1 %614 }
 0x30b   :  { %v840_v61 = vpop.permute.xlu1 %839 }
 0x30e   :  { %v693_v55 = vpop.f32.mrf.mxu0 }
 0x30f   :  { %v694_v52 = vadd.f32 %v693_v55, %v615_v45  ;;  %v1065_v8 = vpop.permute.xlu1 %1064 }
 0x310   :  { %v695_v13 = vpop.f32.mrf.mxu0 }
 0x311   :  { %v696_v5 = vadd.f32 %v695_v13, %v615_v45 }
 0x316   :  { %v468_v25 = vpop.f32.mrf.mxu1 }
 0x317   :  { %v469_v47 = vadd.f32 %v468_v25, %v390_v30 }
 0x318   :  { %v470_v31 = vpop.f32.mrf.mxu1 }
 0x319   :  { %v471_v53 = vadd.f32 %v470_v31, %v390_v30  ;;  %v475_v54 = vadd.f32 %v469_v47, %v248_v48 }
 0x31b   :  { %v476_v63 = vadd.f32 %v471_v53, %v250_v59  ;;  %v700_v26 = vadd.f32 %v694_v52, %v475_v54 }
 0x31d   :  { %v701_v11 = vadd.f32 %v696_v5, %v476_v63 }
 0x320   :  { %v912_v10 = vpop.f32.mrf.mxu1 }
 0x321   :  { %v913_v60 = vadd.f32 %v912_v10, %v835_v36 }
 0x322   :  { %v914_v46 = vpop.f32.mrf.mxu1 }
 0x323   :  { %v915_v7 = vadd.f32 %v914_v46, %v835_v36  ;;  %v923_v27 = vadd.f32 %v913_v60, %v698_v58 }
 0x324   :  { %v918_v50 = vpop.f32.mrf.mxu1 }
 0x325   :  { %v919_v2 = vadd.f32 %v918_v50, %v840_v61  ;;  %v924_v34 = vadd.f32 %v915_v7, %v699_v62 }
 0x326   :  { %v920_v21 = vpop.f32.mrf.mxu1 }
 0x327   :  { %v921_v6 = vadd.f32 %v920_v21, %v840_v61  ;;  %v925_v16 = vadd.f32 %v919_v2, %v700_v26 }
 0x329   :  { %v926_v20 = vadd.f32 %v921_v6, %v701_v11 }
 0x3b7   :  { %v1137_v33 = vpop.f32.mrf.mxu0 }
 0x3b8   :  { %v1138_v3 = vadd.f32 %v1137_v33, %v1060_v1 }
 0x3b9   :  { %v1139_v4 = vpop.f32.mrf.mxu0 }
 0x3ba   :  { %v1148_v0 = vadd.f32 %v1138_v3, %v923_v27  ;;  %v1140_v12 = vadd.f32 %v1139_v4, %v1060_v1 }
 0x3bb   :  { %v1143_v15 = vpop.f32.mrf.mxu0 }
 0x3bc   :  { %1152 = vst [vmem:[#allocation2] sm:$0xff] %v1148_v0  ;;  %v1149_v29 = vadd.f32 %v1140_v12, %v924_v34  ;;  %v1144_v18 = vadd.f32 %v1143_v15, %v1065_v8 }
 0x3bd   :  { %v1145_v19 = vpop.f32.mrf.mxu0 }
 0x3be   :  { %1153 = vst [vmem:[#allocation2 + $0x8] sm:$0xff] %v1149_v29  ;;  %v1150_v23 = vadd.f32 %v1144_v18, %v925_v16  ;;  %v1146_v17 = vadd.f32 %v1145_v19, %v1065_v8 }
 0x3c0   :  { %1154 = vst [vmem:[#allocation2 + $0x10] sm:$0xff] %v1150_v23  ;;  %v1151_v37 = vadd.f32 %v1146_v17, %v926_v20 }
 0x3c2   :  { %1155 = vst [vmem:[#allocation2 + $0x18] sm:$0xff] %v1151_v37 }
 0x3c3   :  { %1270 = shalt.err (!%p1267_p4)
}
 0x3c4   :  { %s1292_s7 = smov 256   ;;  %s1293_s8 = smov 16  }
 0x3c5   :  { %1167 = dma.vmem_to_hbm [thread:$0]  %s1162_s5, 512, %s1834_s3, [#allocation3], %s1292_s7, %s1292_s7, %s1293_s8  }
 0x3c6   :  { %1279 = dma.done.wait [#allocation3], 512  }
 0x3c7   :  { %1280 = vsyncadd [#allocation3], 4294966784 }
 0x3c8   :  { %1171 = vsyncpa [#allocation3], 1 }

</bundles_post_ra>
